<compile_context>
chip_gen: v5e
topology: v5e:2x2
jax: 0.10.0
libtpu: 0.0.40
codegen_flags: <defaults>
</compile_context>

<pallas_src>
import jax
import jax.numpy as jnp
from jax.experimental import pallas as pl
from jax.experimental.pallas import tpu as pltpu


def _bbox_head_kernel(x_ref, w_ref, b_ref, o_ref):
    """One (batch, spatial-tile) grid step.

    x_ref : (1, C, ts)   activations, native NCHW layout (spatial on lanes)
    w_ref : (OUT, C)     full 1x1-conv weight
    b_ref : (OUT, 1)     bias, broadcast along the lane/spatial axis
    o_ref : (1, OUT, ts) output tile (lane-dense)
    """
    x = x_ref[0]                                                        # (C, ts)
    acc = jnp.dot(w_ref[...], x, preferred_element_type=jnp.float32)   # (OUT, ts)
    o_ref[0] = (acc + b_ref[...]).astype(o_ref.dtype)


def bbox_head_forward(x_nchw, weight, bias, *, num_anchors=3,
                      spatial_tile=2048, use_bf16=False):
    """Pallas implementation of BboxHead.forward.

    x_nchw : (N, C, H, W) float32
    weight : (A*4, C)     float32  (PyTorch conv weight squeezed over 1x1 kernel)
    bias   : (A*4,)       float32
    returns: (N, H*W*A, 4) float32
    """
    N, C, H, W = x_nchw.shape
    OUT = num_anchors * 4
    assert weight.shape == (OUT, C)
    assert bias.shape == (OUT,)

    S = H * W
    # Native NCHW layout, no data movement: (N, C, S).
    x = x_nchw.reshape(N, C, S)
    w = weight                                   # (OUT, C)
    b2d = bias.reshape(OUT, 1).astype(jnp.float32)

    if use_bf16:
        x = x.astype(jnp.bfloat16)
        w = w.astype(jnp.bfloat16)

    # Spatial tile: either the full extent (always legal) or a multiple of 128.
    if S <= spatial_tile:
        ts = S
    else:
        ts = max(128, (spatial_tile // 128) * 128)
    grid = (N, pl.cdiv(S, ts))                   # partial last block is masked

    cost = pl.CostEstimate(
        flops=2 * N * S * C * OUT,
        transcendentals=0,
        bytes_accessed=(x.size * x.dtype.itemsize          # read x
                        + N * OUT * S * 4                   # write out
                        + w.size * w.dtype.itemsize         # read weight
                        + OUT * 4),                         # read bias
    )

    out = pl.pallas_call(
        _bbox_head_kernel,
        out_shape=jax.ShapeDtypeStruct((N, OUT, S), jnp.float32),
        grid_spec=pltpu.PrefetchScalarGridSpec(
            num_scalar_prefetch=0,
            grid=grid,
            in_specs=[
                pl.BlockSpec((1, C, ts), lambda n, s: (n, 0, s)),   # x tile
                pl.BlockSpec((OUT, C), lambda n, s: (0, 0)),        # full weight
                pl.BlockSpec((OUT, 1), lambda n, s: (0, 0)),        # bias
            ],
            out_specs=pl.BlockSpec((1, OUT, ts), lambda n, s: (n, 0, s)),
        ),
        compiler_params=pltpu.CompilerParams(
            dimension_semantics=("parallel", "parallel"),
        ),
        cost_estimate=cost,
    )(x, w, b2d)

    # Tiny output-side permute: (N, OUT, S) -> (N, S, OUT) -> (N, S*A, 4).
    # Matches PyTorch's out.permute(0, 2, 3, 1).contiguous().view(N, -1, 4).
    return jnp.transpose(out, (0, 2, 1)).reshape(N, S * num_anchors, 4)


if __name__ == "__main__":
    key = jax.random.PRNGKey(0)
    k_x, k_w, k_b = jax.random.split(key, 3)

    # Shapes consistent with the module defaults: inchannels=64, num_anchors=3.
    N, C, H, W = 2, 64, 16, 16
    A = 3
    OUT = A * 4

    x = jax.random.normal(k_x, (N, C, H, W), dtype=jnp.float32)
    weight = jax.random.normal(k_w, (OUT, C), dtype=jnp.float32) * 0.05
    bias = jax.random.normal(k_b, (OUT,), dtype=jnp.float32) * 0.01

    # Reference (matches PyTorch 1x1 conv + permute(0,2,3,1) + view(N,-1,4)).
    ref = jnp.einsum("nchw,oc->nhwo", x, weight) + bias
    ref = ref.reshape(N, H * W * A, 4)

    # f32 path (tight tolerance).
    out = jax.block_until_ready(bbox_head_forward(x, weight, bias, num_anchors=A))
    assert out.shape == (N, H * W * A, 4), out.shape
    assert jnp.allclose(out, ref, atol=1e-4, rtol=1e-4), "f32 mismatch vs reference"

    # bf16-operand path (halves HBM read traffic; accumulation stays f32).
    out_bf16 = jax.block_until_ready(
        bbox_head_forward(x, weight, bias, num_anchors=A, use_bf16=True))
    assert jnp.allclose(out_bf16, ref, atol=5e-2, rtol=5e-2), "bf16 mismatch vs reference"

    print("KERNEL_OK")
</pallas_src>

<mosaic_0001>
module attributes {stable_mosaic.version = 11 : i64} {
  func.func @_bbox_head_kernel(%arg0: i32, %arg1: i32, %arg2: memref<1x64x256xf32, #tpu.memory_space<vmem>>, %arg3: memref<12x64xf32, #tpu.memory_space<vmem>>, %arg4: memref<12x1xf32, #tpu.memory_space<vmem>>, %arg5: memref<1x12x256xf32, #tpu.memory_space<vmem>>) attributes {dimension_semantics = [#tpu.dimension_semantics<parallel>, #tpu.dimension_semantics<parallel>], iteration_bounds = array<i64: 2, 1>, scalar_prefetch = 0 : i64, scratch_operands = 0 : i64, tpu.core_type = #tpu.core_type<tc>, window_params = [{transform_indices = @transform_0, window_bounds = array<i64: 1, 64, 256>}, {pipeline_mode = #tpu.pipeline_mode<synchronous>, transform_indices = @transform_1, window_bounds = array<i64: 12, 64>}, {pipeline_mode = #tpu.pipeline_mode<synchronous>, transform_indices = @transform_2, window_bounds = array<i64: 12, 1>}, {transform_indices = @transform_3, window_bounds = array<i64: 1, 12, 256>}]} {
    %c0 = arith.constant 0 : index
    %c0_0 = arith.constant 0 : index
    %c0_1 = arith.constant 0 : index
    %0 = vector.load %arg2[%c0, %c0_0, %c0_1] : memref<1x64x256xf32, #tpu.memory_space<vmem>>, vector<1x64x256xf32>
    %1 = vector.shape_cast %0 : vector<1x64x256xf32> to vector<64x256xf32>
    %c0_2 = arith.constant 0 : index
    %c0_3 = arith.constant 0 : index
    %2 = vector.load %arg3[%c0_2, %c0_3] : memref<12x64xf32, #tpu.memory_space<vmem>>, vector<12x64xf32>
    %cst = arith.constant dense<0.000000e+00> : vector<12x256xf32>
    %3 = tpu.matmul %2, %1, %cst {dimension_numbers = #tpu.dot_dimension_numbers<[1], [0], [0], [1], [0, 0, 1, 1], [], []>} : vector<12x64xf32>, vector<64x256xf32>, vector<12x256xf32> -> vector<12x256xf32>
    %c0_4 = arith.constant 0 : index
    %c0_5 = arith.constant 0 : index
    %4 = vector.load %arg4[%c0_4, %c0_5] : memref<12x1xf32, #tpu.memory_space<vmem>>, vector<12x1xf32>
    %5 = vector.broadcast %4 : vector<12x1xf32> to vector<12x256xf32>
    %6 = arith.addf %3, %5 : vector<12x256xf32>
    %c0_6 = arith.constant 0 : index
    %c0_7 = arith.constant 0 : index
    %c0_8 = arith.constant 0 : index
    %7 = vector.load %arg5[%c0_6, %c0_7, %c0_8] : memref<1x12x256xf32, #tpu.memory_space<vmem>>, vector<1x12x256xf32>
    %8 = vector.shape_cast %7 : vector<1x12x256xf32> to vector<12x256xf32>
    %9 = vector.shape_cast %6 : vector<12x256xf32> to vector<1x12x256xf32>
    tpu.vector_store %arg5[%c0_6, %c0_7, %c0_8], %9 {strides = array<i32>} : memref<1x12x256xf32, #tpu.memory_space<vmem>>, vector<1x12x256xf32>,
    return
  }
  func.func @transform_0(%arg0: i32, %arg1: i32) -> (i32, i32, i32) {
    %c0_i32 = arith.constant 0 : i32
    %c0_i32_0 = arith.constant 0 : i32
    return %arg0, %c0_i32, %arg1 : i32, i32, i32
  }
  func.func @transform_1(%arg0: i32, %arg1: i32) -> (i32, i32) {
    %c0_i32 = arith.constant 0 : i32
    %c0_i32_0 = arith.constant 0 : i32
    %c0_i32_1 = arith.constant 0 : i32
    return %c0_i32, %c0_i32_0 : i32, i32
  }
  func.func @transform_2(%arg0: i32, %arg1: i32) -> (i32, i32) {
    %c0_i32 = arith.constant 0 : i32
    %c0_i32_0 = arith.constant 0 : i32
    %c0_i32_1 = arith.constant 0 : i32
    return %c0_i32, %c0_i32_0 : i32, i32
  }
  func.func @transform_3(%arg0: i32, %arg1: i32) -> (i32, i32, i32) {
    %c0_i32 = arith.constant 0 : i32
    %c0_i32_0 = arith.constant 0 : i32
    return %arg0, %c0_i32, %arg1 : i32, i32, i32
  }
}

</mosaic_0001>

<bundles_post_ra>
// kernel: tpu_custom_call.1
= control target key start
LH: loop header
LB: loop body
LE: loop exit
PB: predicated region body
PF: predicated region fallthrough
CT: control target
= control target key end

     0   :  { %8 = vsyncpa [#allocation3], 0  ;;  %s720_s0 = inlined_call_operand.hbm [shape: f32[2,64,256], index: 0, kind: input, shape index: {}]   ;;  %s721_s1 = inlined_call_operand.vmem [shape: f32[12,64], index: 1, kind: input, shape index: {}]   ;;  %s722_s2 = inlined_call_operand.vmem [shape: f32[12,1], index: 2, kind: input, shape index: {}]   ;;  %s723_s3 = inlined_call_operand.vmem [shape: f32[2,12,256], index: 3, kind: output, shape index: {}]  }
   0x1   :  { %10 = vsyncpa [#allocation3 + $0x1], 0  ;;  %s602_s12 = smov 0   ;;  %s604_s13 = smov 0  }
   0x2   :  { %s606_s14 = smov 0   ;;  %s608_s15 = smov 0  }
   0x3   :  { %s610_s16 = smov 0   ;;  %s612_s17 = smov 0  }
   0x4 LB: > { %s403_s18 = sadd.s32 4294967295, %s577_s17   ;;  %s28_s19 = sadd.s32 1, %s573_s16  ;;  %s577_s17 = sphi %s612_s17, %s16_s17   ;;  %s573_s16 = sphi %s610_s16, %s730_s16   ;;  %s569_s15 = sphi %s608_s15, %s729_s15   ;;  %s565_s14 = sphi %s606_s14, %s728_s14   ;;  %s561_s13 = sphi %s604_s13, %s727_s13   ;;  %s557_s12 = sphi %s602_s12, %s726_s12  }
   0x5   : > { %p30_p0 = scmp.ge.s32.totalorder %s28_s19, 2  ;;  %s37_s20 = sadd.s32 1, %s565_s14 }
   0x6   : > { %p44_p1 = scmp.ne.s32.totalorder %s565_s14, %s561_s13  ;;  %p45_p2 = scmp.eq.s32.totalorder %s577_s17, 0 }
   0x7   : > { %s732_s19 = smov (%p30_p0, %s28_s19), 0  ;;  %p50_p4 = scmp.ne.s32.totalorder %s561_s13, %s557_s12 }
   0x8   : > { %p638_p3 = por %p45_p2, %p44_p1  ;;  %s32_s22 = ssub.s32 %s573_s16, %s732_s19 }
   0x9   : > { %p51_p5 = scmp.eq.s32.totalorder %s403_s18, 0  ;;  %p35_p6 = scmp.eq.s32.totalorder %s32_s22, 0 }
   0xa   : > { %p444_p8 = scmp.lt.s32.totalorder %s577_s17, 2  ;;  %s150_s25 = sand.u32 1, %s565_s14  }
   0xb   : > { %p645_p7 = por %p51_p5, %p50_p4  ;;  %s420_s26 = sshll.u32 %s573_s16, 7 }
   0xc   : > { %s651_s24 = scalar_select %p35_p6, %s565_s14, %s37_s20  }
   0xd   : > { %s407_s27 = sshll.u32 %s150_s25, 7  ;;  %s161_s30 = scalar_lea.hbm %s720_s0, %s420_s26 }
   0xe   : > { %s162_s4 = sshll.u32 %s161_s30, 4  ;;  %s154_s5 = scalar_lea.vmem [#allocation2], %s407_s27  ;;  %s163_s4 = int_to_ptr.hbm [resolvable:$true] %s162_s4 }
   0xf   : > { %s164_s6 = sshll.u32 %s154_s5, 4  ;;  %p441_p9 = pnand %p444_p8, %p638_p3  ;;  %s165_s6 = int_to_ptr.vmem [resolvable:$true] %s164_s6 }
  0x10   : > { %p410_p10 = scmp.ge.s32.totalorder %s577_s17, 1  ;;  %p172_p11 = scmp.lt.s32.totalorder %s577_s17, 3 }
  0x11   : > { %s151_s7 = scalar_lea.sflag [#allocation3], %s150_s25  ;;  %s579_s8 = smov 256  }
  0x12   : > { %s580_s9 = smov 16   ;;  %p173_p12 = pnand %p410_p10, %p172_p11 }
  0x13   : > { %443 = dma.hbm_to_vmem [thread:$0]  (!%p441_p9), %s163_s4, 2048, %s165_s6, %s151_s7, %s579_s8, %s579_s8, %s580_s9  }
  0x14   : > { %176 = sbr.rel (%p173_p12) target bundleno = 180 (0xb4), region = 32  ;;  %s178_s10 = sand.u32 (!%p173_p12), 1, %s561_s13  }
  0x15   : > { %s411_s11 = sshll.u32 (!%p173_p12), %s178_s10, 7  ;;  %s179_s12 = scalar_lea.sflag (!%p173_p12), [#allocation3], %s178_s10 }
  0x16   : > { %s663_s18 = scalar_lea.vmem (!%p173_p12), [#allocation2], %s411_s11 }
  0x19   : > { %552 = dma.done.wait (%p645_p7), %s179_s12, 2048  }
  0x1a   : > { %554 = vsyncadd (%p645_p7), %s179_s12, 4294965248  ;;  %v581_v0 = vmov 0   ;;  %v235_v1 = vld [vmem:[%s663_s18 + $0x70] sm:$0xff]  ;;  %v236_v2 = vld [vmem:[%s663_s18 + $0x78] sm:$0xff]  ;;  %vm251_vm0 = vcmask 523264   ;;  %p212_p13 = scmp.lt.s32.totalorder %s569_s15, 1 }
  0x1b   : > { %496 = vset.pattern.permute.xlu0 %v581_v0  ;;  %v233_v3 = vld [vmem:[%s663_s18 + $0x60] sm:$0xff]  ;;  %266 = vmatpush.msra.mxu0 %v235_v1  ;;  %v234_v4 = vld [vmem:[%s663_s18 + $0x68] sm:$0xff]  ;;  %v231_v5 = vld [vmem:[%s663_s18 + $0x50] sm:$0xff] }
  0x1c   : > { %422 = vmatpush.msra.mxu2 %v235_v1  ;;  %289 = vmatpush.msra.mxu1 %v236_v2  ;;  %v232_v6 = vld [vmem:[%s663_s18 + $0x58] sm:$0xff]  ;;  %v229_v7 = vld [vmem:[%s663_s18 + $0x40] sm:$0xff]  ;;  %v230_v8 = vld [vmem:[%s663_s18 + $0x48] sm:$0xff]  ;;  %s734_s15 = smov (!%p212_p13, %s569_s15), 1 }
  0x1d   : > { %430 = vmatpush.msra.mxu3 %v236_v2  ;;  %267 = vmatpush.msra.mxu0 %v233_v3  ;;  %v227_v9 = vld [vmem:[%s663_s18 + $0x30] sm:$0xff]  ;;  %v228_v10 = vld [vmem:[%s663_s18 + $0x38] sm:$0xff]  ;;  %v225_v11 = vld [vmem:[%s663_s18 + $0x20] sm:$0xff]  ;;  %s421_s29 = sshll.u32 %s734_s15, 5 }
  0x1e   : > { %423 = vmatpush.msra.mxu2 %v233_v3  ;;  %290 = vmatpush.msra.mxu1 %v234_v4  ;;  %v226_v12 = vld [vmem:[%s663_s18 + $0x28] sm:$0xff]  ;;  %v223_v13 = vld [vmem:[%s663_s18 + $0x10] sm:$0xff]  ;;  %v224_v14 = vld [vmem:[%s663_s18 + $0x18] sm:$0xff]  ;;  %s219_s5 = scalar_lea.vmem %s723_s3, %s421_s29 }
  0x1f   : > { %431 = vmatpush.msra.mxu3 %v234_v4  ;;  %268 = vmatpush.msra.mxu0 %v231_v5  ;;  %v221_v15 = vld [vmem:[%s663_s18] sm:$0xff]  ;;  %v222_v16 = vld [vmem:[%s663_s18 + $0x8] sm:$0xff] }
  0x20   : > { %424 = vmatpush.msra.mxu2 %v231_v5  ;;  %291 = vmatpush.msra.mxu1 %v232_v6  ;;  %v237_v17 = vld [vmem:[%s721_s1] sm:$0xff]  ;;  %v238_v18 = vld [vmem:[%s721_s1 + $0x8] sm:$0xf] }
  0x21   : > { %432 = vmatpush.msra.mxu3 %v232_v6  ;;  %269 = vmatpush.msra.mxu0 %v229_v7  ;;  %v239_v19 = vld [vmem:[%s722_s2] sm:$0xff]  ;;  %v240_v20 = vld [vmem:[%s722_s2 + $0x8] sm:$0xf] }
  0x22   : > { %425 = vmatpush.msra.mxu2 %v229_v7  ;;  %292 = vmatpush.msra.mxu1 %v230_v8 }
  0x23   : > { %433 = vmatpush.msra.mxu3 %v230_v8  ;;  %270 = vmatpush.msra.mxu0 %v227_v9 }
  0x24   : > { %426 = vmatpush.msra.mxu2 %v227_v9  ;;  %293 = vmatpush.msra.mxu1 %v228_v10 }
  0x25   : > { %434 = vmatpush.msra.mxu3 %v228_v10  ;;  %271 = vmatpush.msra.mxu0 %v225_v11 }
  0x26   : > { %427 = vmatpush.msra.mxu2 %v225_v11  ;;  %294 = vmatpush.msra.mxu1 %v226_v12 }
  0x27   : > { %435 = vmatpush.msra.mxu3 %v226_v12  ;;  %272 = vmatpush.msra.mxu0 %v223_v13 }
  0x28   : > { %428 = vmatpush.msra.mxu2 %v223_v13  ;;  %295 = vmatpush.msra.mxu1 %v224_v14 }
  0x29   : > { %436 = vmatpush.msra.mxu3 %v224_v14  ;;  %273 = vmatpush.msra.mxu0 %v221_v15 }
  0x2a   : > { %429 = vmatpush.msra.mxu2 %v221_v15  ;;  %296 = vmatpush.msra.mxu1 %v222_v16 }
  0x2b   : > { %437 = vmatpush.msra.mxu3 %v222_v16  ;;  %414 = vmatmul.msk.f32.vlgmr.msra.gmra.mxu0 %vm251_vm0, %v237_v17 }
  0x2c   : > { %415 = vmatmul.msk.f32.vlgmr.msra.gmra.mxu2 %vm251_vm0, %v238_v18  ;;  %416 = vmatmul.msk.f32.vlgmr.msra.gmra.mxu1 %vm251_vm0, %v237_v17 }
  0x2d   : > { %417 = vmatmul.msk.f32.vlgmr.msra.gmra.mxu3 %vm251_vm0, %v238_v18  ;;  %243 = vperm.xlu0 %496, %v239_v19  }
  0x35   : > { %248 = vperm.xlu0 %496, %v240_v20  }
  0x9f   : > { %v244_v21 = vpop.permute.xlu0 %243 }
  0xa7   : > { %v249_v26 = vpop.permute.xlu0 %248 }
  0xa8   : > { %v275_v22 = vpop.f32.mrf.mxu0 }
  0xa9   : > { %v276_v23 = vadd.f32 %v275_v22, %v244_v21  ;;  %v298_v24 = vpop.f32.mrf.mxu1 }
  0xaa   : > { %v299_v25 = vadd.f32 %v298_v24, %v244_v21 }
  0xab   : > { %304 = vst [vmem:[%s219_s5] sm:$0xff] %v276_v23 }
  0xac   : > { %305 = vst [vmem:[%s219_s5 + $0x8] sm:$0xff] %v299_v25 }
  0xaf   : > { %v278_v27 = vpop.f32.mrf.mxu2 }
  0xb0   : > { %v279_v28 = vadd.f32 %v278_v27, %v249_v26  ;;  %v301_v29 = vpop.f32.mrf.mxu3 }
  0xb1   : > { %v302_v30 = vadd.f32 %v301_v29, %v249_v26 }
  0xb2   : > { %306 = vst [vmem:[%s219_s5 + $0x10] sm:$0xf] %v279_v28 }
  0xb3   : > { %307 = vst [vmem:[%s219_s5 + $0x18] sm:$0xf] %v302_v30 }
  0xb4 PF: > { %s16_s17 = sadd.s32 1, %s577_s17   ;;  %s726_s12 = smov %s561_s13 }
  0xb5   : > { %p13_p0 = scmp.ge.s32.totalorder %s16_s17, 4   ;;  %s727_s13 = smov %s565_s14 }
  0xb6   : > { %s728_s14 = smov %s651_s24  ;;  %s729_s15 = smov %s573_s16 }
  0xb7   : > { %s730_s16 = smov %s732_s19  ;;  %15 = sbr.rel (!%p13_p0) target bundleno = 4 (0x4), region = 72 }
  0xbc   :  { %338 = vsyncpa [#allocation3], 1 }
  0xbd   :  { %340 = vsyncpa [#allocation3 + $0x1], 1 }

</bundles_post_ra>
